<compile_context>
chip_gen: v6e
topology: v6e:2x2x1
jax: 0.10.0
libtpu: 0.0.40
codegen_flags: <defaults>
</compile_context>

<pallas_src>
import numpy as np
import jax
import jax.numpy as jnp
from jax import lax
from jax.experimental import pallas as pl
from jax.experimental.pallas import tpu as pltpu


def _round_up(x: int, m: int) -> int:
    return ((x + m - 1) // m) * m


# ----------------------------------------------------------------------------
# Kernel 1: score every candidate crop against every box in one launch.
#   out row 0 = number of boxes whose center lies strictly inside the crop
#   out row 1 = max IoU(box, crop) over those boxes (-1 if none)
# Trials live on the 128-lane axis (lane dense), boxes on sublanes.  Single
# block: crops (4, Tp) + outputs (2, Tp) + boxes are a few tens of KB of VMEM.
# ----------------------------------------------------------------------------
_BOX_ALIGN = 8   # boxes padded to a multiple of 8 sublanes


def _trial_eval_kernel(boxes_ref, crops_ref, out_ref):
    # boxes_ref: (Np, 4) f32  columns x1, y1, x2, y2 (pad rows = -1e6 sentinel)
    # crops_ref: (4, Tp) f32  rows left, top, right, bottom (pad cols = 0)
    # out_ref:   (2, Tp) f32  row 0 = n_within, row 1 = best masked IoU
    bx1 = boxes_ref[:, 0:1]
    by1 = boxes_ref[:, 1:2]
    bx2 = boxes_ref[:, 2:3]
    by2 = boxes_ref[:, 3:4]

    left = crops_ref[0:1, :]
    top = crops_ref[1:2, :]
    right = crops_ref[2:3, :]
    bottom = crops_ref[3:4, :]

    cx = 0.5 * (bx1 + bx2)
    cy = 0.5 * (by1 + by2)
    within = (left < cx) & (cx < right) & (top < cy) & (cy < bottom)   # (Np, Tp)

    ix1 = jnp.maximum(bx1, left)
    iy1 = jnp.maximum(by1, top)
    ix2 = jnp.minimum(bx2, right)
    iy2 = jnp.minimum(by2, bottom)
    inter = jnp.maximum(ix2 - ix1, 0.0) * jnp.maximum(iy2 - iy1, 0.0)
    area_box = (bx2 - bx1) * (by2 - by1)
    area_crop = (right - left) * (bottom - top)
    # exact divide (eps-clamped denom only guards the all-zero sentinel rows);
    # approx reciprocal could flip borderline best_iou >= min_jaccard tests.
    iou = inter / jnp.maximum(area_box + area_crop - inter, 1e-9)

    out_ref[0:1, :] = jnp.sum(within.astype(jnp.float32), axis=0, keepdims=True)
    out_ref[1:2, :] = jnp.max(jnp.where(within, iou, -1.0), axis=0, keepdims=True)


def evaluate_trials(boxes, crops):
    """boxes: (N, 4) xyxy f32; crops: (T, 4) [left, top, right, bottom].
    Returns (num_within (T,), best_masked_iou (T,)) as numpy arrays."""
    boxes = np.asarray(boxes, np.float32)
    crops = np.asarray(crops, np.float32)
    N = boxes.shape[0]
    T = crops.shape[0]
    # NOTE: for very large N (hundreds+) the (Np, Tp) intermediates should be
    # blocked over boxes with running-sum/max accumulators; SSD targets have
    # tens of boxes, so a single block keeps launch/DMA overhead minimal.
    Np = max(_BOX_ALIGN, _round_up(max(N, 1), _BOX_ALIGN))
    Tp = _round_up(max(T, 1), 128)

    boxes_p = np.full((Np, 4), -1.0e6, np.float32)   # sentinel boxes: never "within"
    boxes_p[:N] = boxes
    crops_t = np.zeros((4, Tp), np.float32)          # zero crops: never "within"
    crops_t[:, :T] = crops.T

    out = pl.pallas_call(
        _trial_eval_kernel,
        out_shape=jax.ShapeDtypeStruct((2, Tp), jnp.float32),
        in_specs=[
            pl.BlockSpec((Np, 4), lambda: (0, 0)),
            pl.BlockSpec((4, Tp), lambda: (0, 0)),
        ],
        out_specs=pl.BlockSpec((2, Tp), lambda: (0, 0)),
    )(jnp.asarray(boxes_p), jnp.asarray(crops_t))
    out = np.asarray(out)
    return out[0, :T], out[1, :T]


# ----------------------------------------------------------------------------
# Kernel 2: F.crop(image, top, left, new_h, new_w) with a static, lane-dense
# output.  out[c, i, j] = image[c, top + i, left + j] for i < new_h, j < new_w,
# zeros elsewhere.  Grid = (channels, output row blocks), both "parallel".
# Per step: one dynamic-offset row-band load from the (unpadded) input plane, a
# VMEM staging copy that re-aligns the clamped rows and lane-pads the width, a
# dynamic lane roll for the column shift, one mask, one lane-dense store.
# Assumes 0 <= top, left, top + new_h <= H, left + new_w <= W (host guarantees).
# ----------------------------------------------------------------------------
_MAX_ROW_TILE = 64   # output rows per grid step (multiple of 8, capped by H)


def _crop_kernel(params_ref, img_ref, out_ref, stage_ref):
    # params_ref: SMEM (4,) int32 = [top, left, new_h, new_w]   (scalar prefetch)
    # img_ref:    (1, H, W)  VMEM block (full, unpadded plane of one channel)
    # out_ref:    (1, RT, Wp) VMEM block (one output row tile, lane dense)
    # stage_ref:  (2*RT, Wp) VMEM scratch (row re-alignment + lane padding)
    top = params_ref[0]
    left = params_ref[1]
    new_h = params_ref[2]
    new_w = params_ref[3]

    H = img_ref.shape[1]
    W = img_ref.shape[2]
    RT = out_ref.shape[1]
    Wp = out_ref.shape[2]

    out_row0 = pl.program_id(1) * RT
    n_valid = new_h - out_row0            # number of output rows carrying data

    @pl.when(n_valid <= 0)
    def _zero_tile():
        out_ref[...] = jnp.zeros_like(out_ref)

    @pl.when(n_valid > 0)
    def _fill_tile():
        start = top + out_row0                       # first source row wanted
        # Clamp the RT-row source window fully in-bounds.  For tiles with
        # n_valid > 0 we have start <= H - 1, so delta = start - start_c < RT.
        start_c = jnp.clip(start, 0, H - RT)
        delta = start - start_c

        band = img_ref[0, pl.ds(start_c, RT), :]     # (RT, W), always in-bounds
        # Stage: rows [0, RT) hold the band, everything else (extra rows and
        # lane-pad columns W..Wp) is untouched garbage that the mask below
        # discards, so no zero-fill of the stage is needed.
        stage_ref[0:RT, 0:W] = band
        # Re-align rows: shifted[i] = band[i + delta] = image[top + out_row0 + i]
        # for i < RT - delta; the wrapped tail rows map to output rows
        # >= H - top >= new_h and are masked.
        shifted = stage_ref[pl.ds(delta, RT), :]     # (RT, Wp)
        # Column shift (jnp.roll semantics): rolled[:, j] = shifted[:, j + left]
        # for j + left < Wp; columns past new_w (incl. wrap/garbage) are masked.
        rolled = pltpu.roll(shifted, shift=(Wp - left) % Wp, axis=1)

        row = lax.broadcasted_iota(jnp.int32, (RT, Wp), 0)
        col = lax.broadcasted_iota(jnp.int32, (RT, Wp), 1)
        keep = (row < n_valid) & (col < new_w)
        out_ref[0, :, :] = jnp.where(keep, rolled, jnp.zeros_like(rolled))


def crop_image(image, top, left, new_h, new_w):
    """Pallas crop with static output shape.

    Returns (C, Hp, Wp) with Hp/Wp the row-tile / 128-lane padded spatial dims;
    the crop occupies [:, :new_h, :new_w] and everything outside it is zero.
    The caller tracks (new_h, new_w) (RandomIoUCrop returns target["crop_hw"]).
    """
    image = jnp.asarray(image)
    C, H, W = image.shape
    if H < 8:
        # Tiny-image fallback: keep the in-kernel RT-row window in bounds.
        image = jnp.pad(image, ((0, 0), (0, 8 - H), (0, 0)))
        H = 8
    RT = min(_MAX_ROW_TILE, (H // 8) * 8)     # row tile: multiple of 8, <= H
    Hp = _round_up(H, RT)
    Wp = _round_up(W, 128)
    nrb = Hp // RT
    params = jnp.asarray([top, left, new_h, new_w], jnp.int32)

    isz = np.dtype(image.dtype).itemsize

    def _tile_bytes(r, c):
        return _round_up(r, 8) * _round_up(c, 128) * isz

    # double-buffered input plane + double-buffered output tiles + stage scratch
    vmem_need = 2 * _tile_bytes(H, W) + 2 * _tile_bytes(RT, Wp) + _tile_bytes(2 * RT, Wp)
    vmem_limit = int(min(max(vmem_need + (8 << 20), 32 << 20), 112 << 20))

    # TODO(synk): for very small crops most input rows are still streamed; a
    # memory_space=pl.ANY input with manual row-band DMAs would fetch only
    # rows [top, top+new_h) at the cost of hand-rolled double buffering.
    out = pl.pallas_call(
        _crop_kernel,
        out_shape=jax.ShapeDtypeStruct((C, Hp, Wp), image.dtype),
        grid_spec=pltpu.PrefetchScalarGridSpec(
            num_scalar_prefetch=1,
            grid=(C, nrb),
            in_specs=[pl.BlockSpec((1, H, W), lambda c, rb, p: (c, 0, 0))],
            out_specs=pl.BlockSpec((1, RT, Wp), lambda c, rb, p: (c, rb, 0)),
            scratch_shapes=[pltpu.VMEM((2 * RT, Wp), image.dtype)],
        ),
        compiler_params=pltpu.CompilerParams(
            dimension_semantics=("parallel", "parallel"),   # (C x row blocks) across TCs on v7x
            vmem_limit_bytes=vmem_limit,
        ),
    )(params, image)
    return out


# ----------------------------------------------------------------------------
# Host-side wrapper reproducing RandomIoUCrop.forward control flow.
# ----------------------------------------------------------------------------
class RandomIoUCrop:
    def __init__(self, csv_file_path=None, min_scale=0.3, max_scale=1.0,
                 min_aspect_ratio=0.5, max_aspect_ratio=2.0,
                 sampler_options=None, trials=40, max_rounds=64):
        # TODO(synk): the csv_file_path timing log and the COCO get_image_name
        # lookup in the reference are host-side file I/O with no Pallas
        # equivalent; omitted.
        self.csv_file_path = csv_file_path
        self.min_scale = min_scale
        self.max_scale = max_scale
        self.min_aspect_ratio = min_aspect_ratio
        self.max_aspect_ratio = max_aspect_ratio
        if sampler_options is None:
            sampler_options = [0.0, 0.1, 0.3, 0.5, 0.7, 0.9, 1.0]
        self.options = sampler_options
        self.trials = trials
        # the reference `while True` terminates with probability 1; bounded here.
        self.max_rounds = max_rounds

    def __call__(self, image, target, key):
        if target is None:
            raise ValueError("The targets can't be None for this transform.")
        image = jnp.asarray(image)
        if image.ndim == 2:
            image = image[None, :, :]
        if image.ndim != 3:
            raise ValueError("image should be 2/3 dimensional.")

        C, H, W = image.shape
        orig_w, orig_h = W, H
        boxes = np.asarray(target["boxes"], np.float32)
        labels = np.asarray(target["labels"])
        N = boxes.shape[0]

        R, T = self.max_rounds, self.trials
        # One tiny device->host sync for the seed; all candidate sampling and
        # selection stay on the host so the only device round-trips per image
        # are the two kernel launches below.
        # TODO(synk): fully on-device candidate generation + selection would
        # fuse this into a single launch (pltpu PRNG + scalar prefetch).
        seed = int(jax.random.randint(key, (), 0, np.iinfo(np.int32).max))
        rng = np.random.default_rng(seed)
        opt_idx = rng.integers(0, len(self.options), size=(R,))

        # Sample every round's `trials` candidate crops up front (same math as
        # the reference inner loop) so ONE kernel launch scores all of them.
        r_scale = rng.random((R, T, 2))
        r_pos = rng.random((R, T, 2))
        scale = self.min_scale + (self.max_scale - self.min_scale) * r_scale
        new_w = (orig_w * scale[..., 0]).astype(np.int32)
        new_h = (orig_h * scale[..., 1]).astype(np.int32)
        ar = new_w / np.maximum(new_h, 1)
        left = ((orig_w - new_w) * r_pos[..., 0]).astype(np.int32)
        top = ((orig_h - new_h) * r_pos[..., 1]).astype(np.int32)
        right = left + new_w
        bottom = top + new_h
        geo_ok = ((self.min_aspect_ratio <= ar) & (ar <= self.max_aspect_ratio)
                  & (left != right) & (top != bottom))

        crops = np.stack([left, top, right, bottom], axis=-1).reshape(R * T, 4)
        n_within, best_iou = evaluate_trials(boxes, crops)      # ONE Pallas launch
        n_within = n_within.reshape(R, T)
        best_iou = best_iou.reshape(R, T)

        for r in range(R):
            min_jaccard = self.options[int(opt_idx[r])]
            if min_jaccard >= 1.0:
                return image, {"boxes": jnp.asarray(boxes), "labels": jnp.asarray(labels),
                               "keep": np.ones((N,), bool),
                               "crop_hw": (orig_h, orig_w)}
            valid = geo_ok[r] & (n_within[r] > 0.5) & (best_iou[r] >= min_jaccard)
            if not valid.any():
                continue  # mirrors re-entering the while loop with a new option
            t = int(np.argmax(valid))  # first successful trial of this round

            l, tp = int(left[r, t]), int(top[r, t])
            nw, nh = int(new_w[r, t]), int(new_h[r, t])
            # Adjusted boxes only for the single winning trial (host numpy).
            cx = 0.5 * (boxes[:, 0] + boxes[:, 2])
            cy = 0.5 * (boxes[:, 1] + boxes[:, 3])
            keep = (l < cx) & (cx < l + nw) & (tp < cy) & (cy < tp + nh)
            kept = boxes[keep].copy()
            kept[:, 0::2] -= l
            kept[:, 1::2] -= tp
            kept[:, 0::2] = np.clip(kept[:, 0::2], 0.0, nw)
            kept[:, 1::2] = np.clip(kept[:, 1::2], 0.0, nh)

            cropped = crop_image(image, tp, l, nh, nw)           # Pallas kernel
            # TODO(synk): the reference (missing a `return` after F.crop) keeps
            # re-cropping until option >= 1.0 is drawn; we return after the first
            # successful crop like the upstream torchvision RandomIoUCrop.
            return cropped, {"boxes": jnp.asarray(kept),
                             "labels": jnp.asarray(labels[keep]),
                             "keep": keep,
                             "crop_hw": (nh, nw)}

        return image, {"boxes": jnp.asarray(boxes), "labels": jnp.asarray(labels),
                       "keep": np.ones((N,), bool), "crop_hw": (orig_h, orig_w)}


if __name__ == "__main__":
    key = jax.random.PRNGKey(0)
    k_img, k_box, k_wh, k_lbl, k_run = jax.random.split(key, 5)

    C, H, W = 3, 16, 16
    image = jax.random.uniform(k_img, (C, H, W), jnp.float32)

    N = 8
    xy = jnp.floor(jax.random.uniform(k_box, (N, 2), minval=0.0, maxval=10.0))
    wh = jnp.floor(jax.random.uniform(k_wh, (N, 2), minval=2.0, maxval=6.0))
    x2y2 = jnp.minimum(xy + wh, jnp.array([float(W), float(H)], jnp.float32))
    boxes = jnp.concatenate([xy, x2y2], axis=1).astype(jnp.float32)   # (N, 4) xyxy
    labels = jax.random.randint(k_lbl, (N,), 1, 10)

    # --- kernel smoke tests with host reference checks -----------------------
    smoke_crops = np.asarray([[2.0, 3.0, 12.0, 14.0],
                              [0.0, 0.0, 16.0, 16.0]], np.float32)
    niw, biou = evaluate_trials(np.asarray(boxes), smoke_crops)
    b = np.asarray(boxes, np.float64)
    for i, (l_, t_, r_, bt_) in enumerate(smoke_crops):
        cxh = 0.5 * (b[:, 0] + b[:, 2])
        cyh = 0.5 * (b[:, 1] + b[:, 3])
        within = (l_ < cxh) & (cxh < r_) & (t_ < cyh) & (cyh < bt_)
        ix1 = np.maximum(b[:, 0], l_); iy1 = np.maximum(b[:, 1], t_)
        ix2 = np.minimum(b[:, 2], r_); iy2 = np.minimum(b[:, 3], bt_)
        inter = np.maximum(ix2 - ix1, 0) * np.maximum(iy2 - iy1, 0)
        union = ((b[:, 2] - b[:, 0]) * (b[:, 3] - b[:, 1])
                 + (r_ - l_) * (bt_ - t_) - inter)
        iou = inter / np.maximum(union, 1e-9)
        ref_best = float(np.max(np.where(within, iou, -1.0)))
        assert abs(float(niw[i]) - float(within.sum())) < 1e-3
        assert abs(float(biou[i]) - ref_best) < 1e-4

    top_, left_, nh_, nw_ = 3, 2, 11, 10
    smoke_img = np.asarray(crop_image(image, top_, left_, nh_, nw_))
    ref_crop = np.asarray(image)[:, top_:top_ + nh_, left_:left_ + nw_]
    np.testing.assert_allclose(smoke_img[:, :nh_, :nw_], ref_crop, rtol=0, atol=0)
    assert not np.any(smoke_img[:, nh_:, :])
    assert not np.any(smoke_img[:, :nh_, nw_:])

    # --- full transform -------------------------------------------------------
    xform = RandomIoUCrop(trials=40)
    out_img, out_tgt = xform(image, {"boxes": boxes, "labels": labels}, k_run)
    jax.block_until_ready(out_img)
    jax.block_until_ready(out_tgt["boxes"])
    print("KERNEL_OK")
</pallas_src>

<mosaic_0001>
module attributes {stable_mosaic.version = 11 : i64} {
  func.func @_trial_eval_kernel(%arg0: memref<8x4xf32, #tpu.memory_space<vmem>>, %arg1: memref<4x128xf32, #tpu.memory_space<vmem>>, %arg2: memref<2x128xf32, #tpu.memory_space<vmem>>) attributes {dimension_semantics = [], scalar_prefetch = 0 : i64, scratch_operands = 0 : i64, tpu.core_type = #tpu.core_type<tc>} {
    %c0 = arith.constant 0 : index
    %c0_0 = arith.constant 0 : index
    %0 = vector.load %arg0[%c0, %c0_0] : memref<8x4xf32, #tpu.memory_space<vmem>>, vector<8x1xf32>
    %c0_1 = arith.constant 0 : index
    %c1 = arith.constant 1 : index
    %1 = vector.load %arg0[%c0_1, %c1] : memref<8x4xf32, #tpu.memory_space<vmem>>, vector<8x1xf32>
    %c0_2 = arith.constant 0 : index
    %c2 = arith.constant 2 : index
    %2 = vector.load %arg0[%c0_2, %c2] : memref<8x4xf32, #tpu.memory_space<vmem>>, vector<8x1xf32>
    %c0_3 = arith.constant 0 : index
    %c3 = arith.constant 3 : index
    %3 = vector.load %arg0[%c0_3, %c3] : memref<8x4xf32, #tpu.memory_space<vmem>>, vector<8x1xf32>
    %c0_4 = arith.constant 0 : index
    %c0_5 = arith.constant 0 : index
    %4 = vector.load %arg1[%c0_4, %c0_5] : memref<4x128xf32, #tpu.memory_space<vmem>>, vector<1x128xf32>
    %c1_6 = arith.constant 1 : index
    %c0_7 = arith.constant 0 : index
    %5 = vector.load %arg1[%c1_6, %c0_7] : memref<4x128xf32, #tpu.memory_space<vmem>>, vector<1x128xf32>
    %c2_8 = arith.constant 2 : index
    %c0_9 = arith.constant 0 : index
    %6 = vector.load %arg1[%c2_8, %c0_9] : memref<4x128xf32, #tpu.memory_space<vmem>>, vector<1x128xf32>
    %c3_10 = arith.constant 3 : index
    %c0_11 = arith.constant 0 : index
    %7 = vector.load %arg1[%c3_10, %c0_11] : memref<4x128xf32, #tpu.memory_space<vmem>>, vector<1x128xf32>
    %8 = arith.addf %0, %2 : vector<8x1xf32>
    %cst = arith.constant 5.000000e-01 : f32
    %9 = vector.broadcast %cst : f32 to vector<8x1xf32>
    %10 = arith.mulf %9, %8 : vector<8x1xf32>
    %11 = arith.addf %1, %3 : vector<8x1xf32>
    %cst_12 = arith.constant 5.000000e-01 : f32
    %12 = vector.broadcast %cst_12 : f32 to vector<8x1xf32>
    %13 = arith.mulf %12, %11 : vector<8x1xf32>
    %14 = vector.broadcast %4 : vector<1x128xf32> to vector<8x128xf32>
    %15 = vector.broadcast %10 : vector<8x1xf32> to vector<8x128xf32>
    %16 = arith.cmpf olt, %14, %15 : vector<8x128xf32>
    %17 = vector.broadcast %10 : vector<8x1xf32> to vector<8x128xf32>
    %18 = vector.broadcast %6 : vector<1x128xf32> to vector<8x128xf32>
    %19 = arith.cmpf olt, %17, %18 : vector<8x128xf32>
    %20 = arith.andi %16, %19 : vector<8x128xi1>
    %21 = vector.broadcast %5 : vector<1x128xf32> to vector<8x128xf32>
    %22 = vector.broadcast %13 : vector<8x1xf32> to vector<8x128xf32>
    %23 = arith.cmpf olt, %21, %22 : vector<8x128xf32>
    %24 = arith.andi %20, %23 : vector<8x128xi1>
    %25 = vector.broadcast %13 : vector<8x1xf32> to vector<8x128xf32>
    %26 = vector.broadcast %7 : vector<1x128xf32> to vector<8x128xf32>
    %27 = arith.cmpf olt, %25, %26 : vector<8x128xf32>
    %28 = arith.andi %24, %27 : vector<8x128xi1>
    %29 = vector.broadcast %0 : vector<8x1xf32> to vector<8x128xf32>
    %30 = vector.broadcast %4 : vector<1x128xf32> to vector<8x128xf32>
    %31 = arith.maximumf %29, %30 : vector<8x128xf32>
    %32 = vector.broadcast %1 : vector<8x1xf32> to vector<8x128xf32>
    %33 = vector.broadcast %5 : vector<1x128xf32> to vector<8x128xf32>
    %34 = arith.maximumf %32, %33 : vector<8x128xf32>
    %35 = vector.broadcast %2 : vector<8x1xf32> to vector<8x128xf32>
    %36 = vector.broadcast %6 : vector<1x128xf32> to vector<8x128xf32>
    %37 = arith.minimumf %35, %36 : vector<8x128xf32>
    %38 = vector.broadcast %3 : vector<8x1xf32> to vector<8x128xf32>
    %39 = vector.broadcast %7 : vector<1x128xf32> to vector<8x128xf32>
    %40 = arith.minimumf %38, %39 : vector<8x128xf32>
    %41 = arith.subf %37, %31 : vector<8x128xf32>
    %cst_13 = arith.constant 0.000000e+00 : f32
    %42 = vector.broadcast %cst_13 : f32 to vector<8x128xf32>
    %43 = arith.maximumf %41, %42 : vector<8x128xf32>
    %44 = arith.subf %40, %34 : vector<8x128xf32>
    %cst_14 = arith.constant 0.000000e+00 : f32
    %45 = vector.broadcast %cst_14 : f32 to vector<8x128xf32>
    %46 = arith.maximumf %44, %45 : vector<8x128xf32>
    %47 = arith.mulf %43, %46 : vector<8x128xf32>
    %48 = arith.subf %2, %0 : vector<8x1xf32>
    %49 = arith.subf %3, %1 : vector<8x1xf32>
    %50 = arith.mulf %48, %49 : vector<8x1xf32>
    %51 = arith.subf %6, %4 : vector<1x128xf32>
    %52 = arith.subf %7, %5 : vector<1x128xf32>
    %53 = arith.mulf %51, %52 : vector<1x128xf32>
    %54 = vector.broadcast %50 : vector<8x1xf32> to vector<8x128xf32>
    %55 = vector.broadcast %53 : vector<1x128xf32> to vector<8x128xf32>
    %56 = arith.addf %54, %55 : vector<8x128xf32>
    %57 = arith.subf %56, %47 : vector<8x128xf32>
    %cst_15 = arith.constant 9.99999971E-10 : f32
    %58 = vector.broadcast %cst_15 : f32 to vector<8x128xf32>
    %59 = arith.maximumf %57, %58 : vector<8x128xf32>
    %60 = arith.divf %47, %59 : vector<8x128xf32>
    %61 = arith.extui %28 : vector<8x128xi1> to vector<8x128xi32>
    %62 = arith.sitofp %61 : vector<8x128xi32> to vector<8x128xf32>
    %cst_16 = arith.constant dense<0.000000e+00> : vector<128xf32>
    %63 = vector.multi_reduction <add>, %62, %cst_16 [0] : vector<8x128xf32> to vector<128xf32>
    %64 = vector.shape_cast %63 : vector<128xf32> to vector<1x128xf32>
    %c0_17 = arith.constant 0 : index
    %c0_18 = arith.constant 0 : index
    %65 = vector.load %arg2[%c0_17, %c0_18] : memref<2x128xf32, #tpu.memory_space<vmem>>, vector<1x128xf32>
    tpu.vector_store %arg2[%c0_17, %c0_18], %64 {strides = array<i32>} : memref<2x128xf32, #tpu.memory_space<vmem>>, vector<1x128xf32>,
    %cst_19 = arith.constant -1.000000e+00 : f32
    %66 = vector.broadcast %cst_19 : f32 to vector<8x128xf32>
    %67 = arith.select %28, %60, %66 : vector<8x128xi1>, vector<8x128xf32>
    %cst_20 = arith.constant dense<0xFF800000> : vector<128xf32>
    %68 = vector.multi_reduction <maximumf>, %67, %cst_20 [0] : vector<8x128xf32> to vector<128xf32>
    %69 = vector.shape_cast %68 : vector<128xf32> to vector<1x128xf32>
    %c1_21 = arith.constant 1 : index
    %c0_22 = arith.constant 0 : index
    %70 = vector.load %arg2[%c1_21, %c0_22] : memref<2x128xf32, #tpu.memory_space<vmem>>, vector<1x128xf32>
    tpu.vector_store %arg2[%c1_21, %c0_22], %69 {strides = array<i32>} : memref<2x128xf32, #tpu.memory_space<vmem>>, vector<1x128xf32>,
    return
  }
}

</mosaic_0001>

<bundles_post_ra>
// kernel: tpu_custom_call.1
= control target key start
LH: loop header
LB: loop body
LE: loop exit
PB: predicated region body
PF: predicated region fallthrough
CT: control target
= control target key end

     0   :  { %s178_s11 = smov 2   ;;  %s179_s12 = smov 126   ;;  %s228_s0 = inlined_call_operand.vmem [shape: f32[8,4], index: 0, kind: input, shape index: {}]   ;;  %s229_s1 = inlined_call_operand.vmem [shape: f32[4,128], index: 1, kind: input, shape index: {}]   ;;  %s230_s2 = inlined_call_operand.hbm [shape: f32[2,128], index: 2, kind: output, shape index: {}]  }
   0x1   :  { %v12_v0 = vld [vmem:[%s228_s0] sm:$0xff] }
   0x2   :  { %80 = vrot.lane.b32.xlu0 %v12_v0, %s178_s11  ;;  %18 = vrot.lane.b32.xlu1 %v12_v0, %s179_s12 }
   0x3   :  { %7 = vsyncpa [#allocation3], 0  ;;  %v180_v1 = vmov 0   ;;  %v181_v2 = vmov 1   ;;  %v182_v3 = vmov 2   ;;  %v183_v4 = vmov 3  }
   0x4   :  { %147 = vset.pattern.permute.xlu1 %v180_v1  ;;  %148 = vset.pattern.permute.xlu0 %v181_v2  ;;  %v13_v5 = vld [vmem:[%s229_s1] sm:$0x1]  ;;  %v15_v6 = vld [vmem:[%s229_s1 + $0x2] sm:$0x1]  ;;  %v16_v8 = vld [vmem:[%s229_s1 + $0x3] sm:$0x1]  ;;  %v23_v15 = vlaneseq }
   0x5   :  { %v89_v7 = vsub.f32 %v15_v6, %v13_v5  ;;  %v14_v9 = vld [vmem:[%s229_s1 + $0x1] sm:$0x1]  ;;  %s184_s20 = smov 127   ;;  %v185_v43 = vmov 0.0   ;;  %s186_s1 = smov [#allocation2]  }
   0x6   :  { %56 = vperm.xlu1 %147, %v12_v0   ;;  %v90_v10 = vsub.f32 %v16_v8, %v14_v9  ;;  %v24_v17 = vshrl.u32 %v23_v15, 7  ;;  %s129_s21 = sshll.u32 %s186_s1, 4  ;;  %s130_s21 = int_to_ptr.vmem [resolvable:$true] %s129_s21 }
   0x7   :  { %s156_s22 = scalar_lea.vmem %s130_s21, 32  ;;  %p161_p1 = scmp.lt.s32.totalorder %s130_s21, %s130_s21 }
   0x8   :  { %v25_v18 = vsub.s32 0, %v24_v17  ;;  %v91_v19 = vmul.f32 %v90_v10, %v89_v7  ;;  %p157_p0 = scmp.ne.s32.totalorder %s130_s21, %s156_s22  ;;  %p162_p2 = scmp.lt.s32.totalorder %s156_s22, %s156_s22 }
   0xa   :  { %149 = vset.pattern.permute.xlu1 %v182_v3  ;;  %v100_v20 = vrot.slane %v91_v19, %v25_v18  ;;  %v26_v21 = vrot.slane %v13_v5, %v25_v18  ;;  %v36_v23 = vrot.slane %v15_v6, %v25_v18  ;;  %v52_v31 = vrot.slane %v16_v8, %v25_v18  ;;  %p163_p3 = por %p162_p2, %p161_p1 }
   0xb   :  { %66 = vperm.xlu1 %149, %v12_v0   ;;  %v42_v32 = vrot.slane %v14_v9, %v25_v18 }
   0xc   :  { %p164_p4 = pnand %p163_p3, %p157_p0 }
   0xf   :  { %150 = vset.pattern.permute.xlu1 %v183_v4 }
  0x10   :  { %71 = vperm.xlu1 %150, %v12_v0  }
  0x14   :  { %152 = vset.pattern.permute.xlu1 %v180_v1 }
  0x74   :  { %v81_v11 = vpop.permute.xlu0 %80  ;;  %v19_v12 = vpop.permute.xlu1 %18 }
  0x75   :  { %v83_v13 = vsub.f32 %v12_v0, %v81_v11  ;;  %v21_v14 = vadd.f32 %v19_v12, %v12_v0 }
  0x77   :  { %85 = vrot.lane.b32.xlu0 %v83_v13, %s184_s20  ;;  %v22_v16 = vmul.f32 0.5, %v21_v14 }
  0x79   :  { %29 = vperm.xlu1 %152, %v22_v16  }
  0x7b   :  { %61 = vperm.xlu0 %148, %v12_v0  }
  0x7d   :  { %153 = vset.pattern.permute.xlu1 %v181_v2 }
  0x7e   :  { %44 = vperm.xlu1 %153, %v22_v16  }
  0x7f   :  { %151 = vset.pattern.permute.xlu0 %v182_v3 }
  0x81   :  { %v57_v22 = vpop.permute.xlu1 %56 }
  0x82   :  { %v59_v24 = vmax.f32 %v57_v22, %v26_v21 }
  0x86   :  { %v67_v25 = vpop.permute.xlu1 %66 }
  0x87   :  { %v69_v26 = vmin.f32 %v67_v25, %v36_v23 }
  0x89   :  { %v75_v27 = vsub.f32 %v69_v26, %v59_v24 }
  0x8b   :  { %v72_v30 = vpop.permute.xlu1 %71  ;;  %v76_v37 = vmax.f32 %v75_v27, 0.0 }
  0x8c   :  { %v74_v34 = vmin.f32 %v72_v30, %v52_v31 }
  0xe9   :  { %v86_v28 = vpop.permute.xlu0 %85 }
  0xea   :  { %v88_v29 = vmul.f32 %v86_v28, %v83_v13 }
  0xec   :  { %94 = vperm.xlu0 %151, %v88_v29  }
  0xf4   :  { %v30_v33 = vpop.permute.xlu1 %29 }
  0xf5   :  { %vm32_vm0 = vcmp.lt.f32.partialorder %v26_v21, %v30_v33  ;;  %vm37_vm1 = vcmp.lt.f32.partialorder %v30_v33, %v36_v23 }
  0xf6   :  { %v62_v35 = vpop.permute.xlu0 %61  ;;  %vm38_vm2 = vmand %vm32_vm0, %vm37_vm1 }
  0xf7   :  { %v64_v36 = vmax.f32 %v62_v35, %v42_v32 }
  0xf9   :  { %v77_v38 = vsub.f32 %v74_v34, %v64_v36  ;;  %v45_v39 = vpop.permute.xlu1 %44 }
  0xfa   :  { %vm47_vm3 = vcmp.lt.f32.partialorder %v42_v32, %v45_v39  ;;  %vm53_vm4 = vcmp.lt.f32.partialorder %v45_v39, %v52_v31 }
  0xfb   :  { %v78_v40 = vmax.f32 %v77_v38, 0.0  ;;  %vm48_vm5 = vmand %vm38_vm2, %vm47_vm3 }
  0xfc   :  { %vm217_vm6 = vmand %vm48_vm5, %vm53_vm4 }
  0xfd   :  { %v79_v42 = vmul.f32 %v78_v40, %v76_v37  ;;  %v137_v44 = vsel %vm217_vm6, 1.0, %v185_v43 }
  0xfe   :  { %v108_v45 = vrot.slane %v137_v44, 4 }
 0x100   :  { %v109_v46 = vadd.f32 %v137_v44, %v108_v45 }
 0x102   :  { %v110_v47 = vrot.slane %v109_v46, 2 }
 0x104   :  { %v111_v48 = vadd.f32 %v110_v47, %v109_v46 }
 0x106   :  { %v112_v49 = vrot.slane %v111_v48, 1 }
 0x108   :  { %v113_v50 = vadd.f32 %v112_v49, %v111_v48 }
 0x10a   :  { %114 = vst [vmem:[#allocation2] sm:$0x1] %v113_v50 }
 0x167   :  { %v95_v51 = vpop.permute.xlu0 %94 }
 0x168   :  { %v101_v52 = vadd.f32 %v100_v20, %v95_v51 }
 0x16a   :  { %v102_v53 = vsub.f32 %v101_v52, %v79_v42 }
 0x16c   :  { %v103_v54 = vmax.f32 %v102_v53, 1e-09 }
 0x16e   :  { %154 = vrcp.f32 %v103_v54 }
 0x17b   :  { %v155_v55 = vpop.eup %154 }
 0x17c   :  { %v105_v56 = vmul.f32 %v155_v55, %v79_v42 }
 0x17e   :  { %v115_v57 = vsel %vm217_vm6, %v105_v56, -1.0 }
 0x17f   :  { %v116_v58 = vrot.slane %v115_v57, 4 }
 0x181   :  { %v117_v59 = vmax.f32 %v115_v57, %v116_v58 }
 0x183   :  { %v118_v60 = vrot.slane %v117_v59, 2 }
 0x185   :  { %v119_v61 = vmax.f32 %v117_v59, %v118_v60 }
 0x187   :  { %v120_v62 = vrot.slane %v119_v61, 1 }
 0x189   :  { %v121_v63 = vmax.f32 %v119_v61, %v120_v62 }
 0x18b   :  { %122 = vst [vmem:[#allocation2 + $0x1] sm:$0x1] %v121_v63 }
 0x18c   :  { %167 = shalt.err (!%p164_p4)
}
 0x18d   :  { %132 = dma.vmem_to_hbm [thread:$0]  %s130_s21, 32, %s230_s2, [#allocation3]  }
 0x18e   :  { %176 = dma.done.wait [#allocation3], 32  }
 0x18f   :  { %177 = vsyncadd [#allocation3], 4294967264 }
 0x190   :  { %136 = vsyncpa [#allocation3], 1 }

</bundles_post_ra>
